<compile_context>
chip_gen: v6e
topology: v6e:2x2x1
jax: 0.10.0
libtpu: 0.0.40
codegen_flags: <defaults>
</compile_context>

<pallas_src>
import math

import jax
import jax.numpy as jnp
from jax.experimental import pallas as pl
from jax.experimental.pallas import tpu as pltpu

D_EMBED = 32
N_HEADS = 4
P_EMBED = D_EMBED // N_HEADS


def mha_kernel(maskb_ref, k_ref, q_ref, v_ref,
               w_in_ref, b_in_ref, wp_ref, bp_ref,
               o_ref):
    nb, s_len, e = k_ref.shape
    t_len = q_ref.shape[1]
    h = w_in_ref.shape[1]

    rs = nb * s_len            # coalesced key/value rows
    rt = nb * t_len            # coalesced query rows

    k2 = k_ref[...].reshape(rs, e)
    q2 = q_ref[...].reshape(rt, e)
    v2 = v_ref[...].reshape(rs, e)

    # Broadcast the activations across the head axis once; together with the
    # host-side per-head weight split this turns "projection + head split"
    # into a single batched matmul per tensor (no lane slices, no transposes).
    kb = jnp.broadcast_to(k2[None], (h, rs, e))
    qb = jnp.broadcast_to(q2[None], (h, rt, e))
    vb = jnp.broadcast_to(v2[None], (h, rs, e))

    # Stacked in-projection weights: slot 0 = K, 1 = Q (scale folded), 2 = V.
    K = jnp.einsum('hre,hep->hrp', kb, w_in_ref[0],
                   preferred_element_type=jnp.float32) + b_in_ref[0]
    Q = jnp.einsum('hre,hep->hrp', qb, w_in_ref[1],
                   preferred_element_type=jnp.float32) + b_in_ref[1]
    V = jnp.einsum('hre,hep->hrp', vb, w_in_ref[2],
                   preferred_element_type=jnp.float32) + b_in_ref[2]

    # Per-head logits for all heads in one batched matmul (contract last dims,
    # transpose folded into the MXU operand feed).
    att = jnp.einsum('hrp,hsp->hrs', Q, K,
                     preferred_element_type=jnp.float32)
    # Additive bias: user mask + cross-batch blocking (0.0 / -1e30).
    att = att + maskb_ref[...]

    att = att - jnp.max(att, axis=-1, keepdims=True)
    p = jnp.exp(att)
    # Exact reciprocal keeps the 1e-4 check tight; approx=True (EUP vrcp) is a
    # free-slot option if the tolerance is relaxed.
    p = p * pl.reciprocal(jnp.sum(p, axis=-1, keepdims=True), approx=False)

    out = jnp.einsum('hrs,hsp->hrp', p, V,
                     preferred_element_type=jnp.float32)

    # Output projection: per-head partial products, summed over heads — this
    # replaces the head concat with a leading-dim reduction.
    proj = jnp.sum(jnp.einsum('hrp,hpe->hre', out, wp_ref[...],
                              preferred_element_type=jnp.float32), axis=0)
    proj = proj + bp_ref[...]
    o_ref[...] = proj.reshape(nb, t_len, e).astype(o_ref.dtype)


def multi_head_attention(key, query, value, mask, params, block_n=None):
    """key/value: (N,S,E), query: (N,T,E), mask: (T,S) bool -> (N,T,E)."""
    N, S, E = key.shape
    T = query.shape[1]
    H = N_HEADS
    P = E // H
    wk, bk, wq, bq, wv, bv, wp, bp = params

    if block_n is None:
        # Coalesce batches per grid step (amortizes ~0.35us/step overhead and
        # fattens the projection GEMMs), but keep >= 2 grid steps when
        # possible so both v7x TensorCores stay busy.
        block_n = max(1, min(4, N // 2)) if N > 1 else 1
    assert N % block_n == 0, "N must be divisible by block_n"

    inv_sqrt_e = 1.0 / math.sqrt(E)

    # Host-side weight prep: transpose to (in, out), split per head, and fold
    # the 1/sqrt(E) attention scale into the Q projection.
    def split_in_proj(w, b, scale=1.0):
        w_h = (w.T * scale).reshape(E, H, P).transpose(1, 0, 2)   # (H, E, P)
        b_h = (b * scale).reshape(H, 1, P)                        # (H, 1, P)
        return w_h.astype(jnp.float32), b_h.astype(jnp.float32)

    wk_h, bk_h = split_in_proj(wk, bk)
    wq_h, bq_h = split_in_proj(wq, bq, inv_sqrt_e)
    wv_h, bv_h = split_in_proj(wv, bv)
    w_in = jnp.stack([wk_h, wq_h, wv_h])                          # (3, H, E, P)
    b_in = jnp.stack([bk_h, bq_h, bv_h])                          # (3, H, 1, P)
    wp_h = wp.T.reshape(H, P, E).astype(jnp.float32)              # (H, P, E)
    bp2 = bp.reshape(1, E).astype(jnp.float32)

    # Additive mask bias (0 / -1e30), with cross-batch blocks masked so that
    # coalesced batches never attend to each other.  Avoids the -inf NaN
    # hazard of fully-masked rows.
    mask_b = mask.astype(bool)
    same_batch = jnp.eye(block_n, dtype=bool)
    allowed = same_batch[:, None, :, None] & jnp.logical_not(mask_b)[None, :, None, :]
    mask_bias = jnp.where(allowed, 0.0, -1e30).astype(jnp.float32)
    mask_bias = mask_bias.reshape(block_n * T, block_n * S)

    full2 = lambda n: (0, 0)
    full3 = lambda n: (0, 0, 0)
    full4 = lambda n: (0, 0, 0, 0)

    return pl.pallas_call(
        mha_kernel,
        out_shape=jax.ShapeDtypeStruct((N, T, E), query.dtype),
        grid_spec=pltpu.PrefetchScalarGridSpec(
            num_scalar_prefetch=0,
            grid=(N // block_n,),
            in_specs=[
                pl.BlockSpec((block_n * T, block_n * S), full2),       # mask bias
                pl.BlockSpec((block_n, S, E), lambda n: (n, 0, 0)),    # key
                pl.BlockSpec((block_n, T, E), lambda n: (n, 0, 0)),    # query
                pl.BlockSpec((block_n, S, E), lambda n: (n, 0, 0)),    # value
                pl.BlockSpec((3, H, E, P), full4),                     # stacked in-proj W
                pl.BlockSpec((3, H, 1, P), full4),                     # stacked in-proj b
                pl.BlockSpec((H, P, E), full3),                        # proj W
                pl.BlockSpec((1, E), full2),                           # proj b
            ],
            out_specs=pl.BlockSpec((block_n, T, E), lambda n: (n, 0, 0)),
        ),
        compiler_params=pltpu.CompilerParams(
            dimension_semantics=("parallel",)),
    )(mask_bias, key, query, value, w_in, b_in, wp_h, bp2)


def ref_mha(key, query, value, mask, params):
    """Pure-JAX reference mirroring the PyTorch forward."""
    wk, bk, wq, bq, wv, bv, wp, bp = params
    N, S, E = key.shape
    T = query.shape[1]
    H, P = N_HEADS, P_EMBED
    K = key @ wk.T + bk
    Q = query @ wq.T + bq
    V = value @ wv.T + bv
    K = K.reshape(N, S, H, P).transpose(0, 2, 1, 3)
    Q = Q.reshape(N, T, H, P).transpose(0, 2, 1, 3)
    V = V.reshape(N, S, H, P).transpose(0, 2, 1, 3)
    att = jnp.einsum('nhtp,nhsp->nhts', Q, K) / math.sqrt(E)
    att = jnp.where(mask[None, None], -jnp.inf, att)
    p = jax.nn.softmax(att, axis=-1)
    out = jnp.einsum('nhts,nhsp->nhtp', p, V)
    out = out.transpose(0, 2, 1, 3).reshape(N, T, E)
    return out @ wp.T + bp


def init_params(rng, d_embed):
    """Deterministic PyTorch-style uniform(-1/sqrt(in), 1/sqrt(in)) init."""
    keys = jax.random.split(rng, 8)
    bound = 1.0 / math.sqrt(d_embed)
    def u(k, shape):
        return jax.random.uniform(k, shape, jnp.float32, -bound, bound)
    wk, bk = u(keys[0], (d_embed, d_embed)), u(keys[1], (d_embed,))
    wq, bq = u(keys[2], (d_embed, d_embed)), u(keys[3], (d_embed,))
    wv, bv = u(keys[4], (d_embed, d_embed)), u(keys[5], (d_embed,))
    wp, bp = u(keys[6], (d_embed, d_embed)), u(keys[7], (d_embed,))
    return (wk, bk, wq, bq, wv, bv, wp, bp)


if __name__ == "__main__":
    N, S, T, E = 2, 8, 8, D_EMBED

    root = jax.random.PRNGKey(0)
    k_param, k_key, k_query, k_value = jax.random.split(root, 4)

    params = init_params(k_param, E)
    key_t = jax.random.normal(k_key, (N, S, E), jnp.float32)
    query_t = jax.random.normal(k_query, (N, T, E), jnp.float32)
    value_t = jax.random.normal(k_value, (N, S, E), jnp.float32)
    # Causal mask: True (== masked / replaced with -inf) above the diagonal.
    mask = jnp.triu(jnp.ones((T, S), dtype=bool), k=1)

    mha = jax.jit(multi_head_attention)   # host prep + pallas_call in one program
    out = mha(key_t, query_t, value_t, mask, params)
    out = jax.block_until_ready(out)

    expected = ref_mha(key_t, query_t, value_t, mask, params)
    assert out.shape == (N, T, E)
    assert jnp.allclose(out, expected, atol=1e-4, rtol=1e-4), "mismatch vs reference"

    print("KERNEL_OK")
</pallas_src>

<mosaic_0001>
module attributes {stable_mosaic.version = 11 : i64} {
  func.func @mha_kernel(%arg0: i32, %arg1: memref<8x8xf32, #tpu.memory_space<vmem>>, %arg2: memref<1x8x32xf32, #tpu.memory_space<vmem>>, %arg3: memref<1x8x32xf32, #tpu.memory_space<vmem>>, %arg4: memref<1x8x32xf32, #tpu.memory_space<vmem>>, %arg5: memref<3x4x32x8xf32, #tpu.memory_space<vmem>>, %arg6: memref<3x4x1x8xf32, #tpu.memory_space<vmem>>, %arg7: memref<4x8x32xf32, #tpu.memory_space<vmem>>, %arg8: memref<1x32xf32, #tpu.memory_space<vmem>>, %arg9: memref<1x8x32xf32, #tpu.memory_space<vmem>>) attributes {dimension_semantics = [#tpu.dimension_semantics<parallel>], iteration_bounds = array<i64: 2>, scalar_prefetch = 0 : i64, scratch_operands = 0 : i64, tpu.core_type = #tpu.core_type<tc>, window_params = [{pipeline_mode = #tpu.pipeline_mode<synchronous>, transform_indices = @transform_0, window_bounds = array<i64: 8, 8>}, {transform_indices = @transform_1, window_bounds = array<i64: 1, 8, 32>}, {transform_indices = @transform_2, window_bounds = array<i64: 1, 8, 32>}, {transform_indices = @transform_3, window_bounds = array<i64: 1, 8, 32>}, {pipeline_mode = #tpu.pipeline_mode<synchronous>, transform_indices = @transform_4, window_bounds = array<i64: 3, 4, 32, 8>}, {pipeline_mode = #tpu.pipeline_mode<synchronous>, transform_indices = @transform_5, window_bounds = array<i64: 3, 4, 1, 8>}, {pipeline_mode = #tpu.pipeline_mode<synchronous>, transform_indices = @transform_6, window_bounds = array<i64: 4, 8, 32>}, {pipeline_mode = #tpu.pipeline_mode<synchronous>, transform_indices = @transform_7, window_bounds = array<i64: 1, 32>}, {transform_indices = @transform_8, window_bounds = array<i64: 1, 8, 32>}]} {
    %c0 = arith.constant 0 : index
    %c0_0 = arith.constant 0 : index
    %c0_1 = arith.constant 0 : index
    %0 = vector.load %arg2[%c0, %c0_0, %c0_1] : memref<1x8x32xf32, #tpu.memory_space<vmem>>, vector<1x8x32xf32>
    %1 = vector.shape_cast %0 : vector<1x8x32xf32> to vector<8x32xf32>
    %c0_2 = arith.constant 0 : index
    %c0_3 = arith.constant 0 : index
    %c0_4 = arith.constant 0 : index
    %2 = vector.load %arg3[%c0_2, %c0_3, %c0_4] : memref<1x8x32xf32, #tpu.memory_space<vmem>>, vector<1x8x32xf32>
    %3 = vector.shape_cast %2 : vector<1x8x32xf32> to vector<8x32xf32>
    %c0_5 = arith.constant 0 : index
    %c0_6 = arith.constant 0 : index
    %c0_7 = arith.constant 0 : index
    %4 = vector.load %arg4[%c0_5, %c0_6, %c0_7] : memref<1x8x32xf32, #tpu.memory_space<vmem>>, vector<1x8x32xf32>
    %5 = vector.shape_cast %4 : vector<1x8x32xf32> to vector<8x32xf32>
    %6 = vector.shape_cast %1 : vector<8x32xf32> to vector<1x8x32xf32>
    %7 = vector.shape_cast %6 : vector<1x8x32xf32> to vector<1x8x32xf32>
    %8 = vector.broadcast %7 : vector<1x8x32xf32> to vector<4x8x32xf32>
    %9 = vector.shape_cast %3 : vector<8x32xf32> to vector<1x8x32xf32>
    %10 = vector.shape_cast %9 : vector<1x8x32xf32> to vector<1x8x32xf32>
    %11 = vector.broadcast %10 : vector<1x8x32xf32> to vector<4x8x32xf32>
    %12 = vector.shape_cast %5 : vector<8x32xf32> to vector<1x8x32xf32>
    %13 = vector.shape_cast %12 : vector<1x8x32xf32> to vector<1x8x32xf32>
    %14 = vector.broadcast %13 : vector<1x8x32xf32> to vector<4x8x32xf32>
    %c0_8 = arith.constant 0 : index
    %c0_9 = arith.constant 0 : index
    %c0_10 = arith.constant 0 : index
    %c0_11 = arith.constant 0 : index
    %15 = vector.load %arg5[%c0_8, %c0_9, %c0_10, %c0_11] : memref<3x4x32x8xf32, #tpu.memory_space<vmem>>, vector<1x4x32x8xf32>
    %16 = vector.shape_cast %15 : vector<1x4x32x8xf32> to vector<4x32x8xf32>
    "tpu.trace_start"() <{level = 10 : i32, message = "hre,hep->hrp"}> : () -> ()
    %cst = arith.constant dense<0.000000e+00> : vector<4x8x8xf32>
    %17 = tpu.matmul %8, %16, %cst {dimension_numbers = #tpu.dot_dimension_numbers<[2], [1], [1], [2], [0, 0, 0, 1, 1, 2], [0], [0]>} : vector<4x8x32xf32>, vector<4x32x8xf32>, vector<4x8x8xf32> -> vector<4x8x8xf32>
    "tpu.trace_stop"() : () -> ()
    %c0_12 = arith.constant 0 : index
    %c0_13 = arith.constant 0 : index
    %c0_14 = arith.constant 0 : index
    %c0_15 = arith.constant 0 : index
    %18 = vector.load %arg6[%c0_12, %c0_13, %c0_14, %c0_15] : memref<3x4x1x8xf32, #tpu.memory_space<vmem>>, vector<1x4x1x8xf32>
    %19 = vector.shape_cast %18 : vector<1x4x1x8xf32> to vector<4x1x8xf32>
    %20 = vector.broadcast %19 : vector<4x1x8xf32> to vector<4x8x8xf32>
    %21 = arith.addf %17, %20 : vector<4x8x8xf32>
    %c1 = arith.constant 1 : index
    %c0_16 = arith.constant 0 : index
    %c0_17 = arith.constant 0 : index
    %c0_18 = arith.constant 0 : index
    %22 = vector.load %arg5[%c1, %c0_16, %c0_17, %c0_18] : memref<3x4x32x8xf32, #tpu.memory_space<vmem>>, vector<1x4x32x8xf32>
    %23 = vector.shape_cast %22 : vector<1x4x32x8xf32> to vector<4x32x8xf32>
    "tpu.trace_start"() <{level = 10 : i32, message = "hre,hep->hrp"}> : () -> ()
    %cst_19 = arith.constant dense<0.000000e+00> : vector<4x8x8xf32>
    %24 = tpu.matmul %11, %23, %cst_19 {dimension_numbers = #tpu.dot_dimension_numbers<[2], [1], [1], [2], [0, 0, 0, 1, 1, 2], [0], [0]>} : vector<4x8x32xf32>, vector<4x32x8xf32>, vector<4x8x8xf32> -> vector<4x8x8xf32>
    "tpu.trace_stop"() : () -> ()
    %c1_20 = arith.constant 1 : index
    %c0_21 = arith.constant 0 : index
    %c0_22 = arith.constant 0 : index
    %c0_23 = arith.constant 0 : index
    %25 = vector.load %arg6[%c1_20, %c0_21, %c0_22, %c0_23] : memref<3x4x1x8xf32, #tpu.memory_space<vmem>>, vector<1x4x1x8xf32>
    %26 = vector.shape_cast %25 : vector<1x4x1x8xf32> to vector<4x1x8xf32>
    %27 = vector.broadcast %26 : vector<4x1x8xf32> to vector<4x8x8xf32>
    %28 = arith.addf %24, %27 : vector<4x8x8xf32>
    %c2 = arith.constant 2 : index
    %c0_24 = arith.constant 0 : index
    %c0_25 = arith.constant 0 : index
    %c0_26 = arith.constant 0 : index
    %29 = vector.load %arg5[%c2, %c0_24, %c0_25, %c0_26] : memref<3x4x32x8xf32, #tpu.memory_space<vmem>>, vector<1x4x32x8xf32>
    %30 = vector.shape_cast %29 : vector<1x4x32x8xf32> to vector<4x32x8xf32>
    "tpu.trace_start"() <{level = 10 : i32, message = "hre,hep->hrp"}> : () -> ()
    %cst_27 = arith.constant dense<0.000000e+00> : vector<4x8x8xf32>
    %31 = tpu.matmul %14, %30, %cst_27 {dimension_numbers = #tpu.dot_dimension_numbers<[2], [1], [1], [2], [0, 0, 0, 1, 1, 2], [0], [0]>} : vector<4x8x32xf32>, vector<4x32x8xf32>, vector<4x8x8xf32> -> vector<4x8x8xf32>
    "tpu.trace_stop"() : () -> ()
    %c2_28 = arith.constant 2 : index
    %c0_29 = arith.constant 0 : index
    %c0_30 = arith.constant 0 : index
    %c0_31 = arith.constant 0 : index
    %32 = vector.load %arg6[%c2_28, %c0_29, %c0_30, %c0_31] : memref<3x4x1x8xf32, #tpu.memory_space<vmem>>, vector<1x4x1x8xf32>
    %33 = vector.shape_cast %32 : vector<1x4x1x8xf32> to vector<4x1x8xf32>
    %34 = vector.broadcast %33 : vector<4x1x8xf32> to vector<4x8x8xf32>
    %35 = arith.addf %31, %34 : vector<4x8x8xf32>
    "tpu.trace_start"() <{level = 10 : i32, message = "hrp,hsp->hrs"}> : () -> ()
    %cst_32 = arith.constant dense<0.000000e+00> : vector<4x8x8xf32>
    %36 = tpu.matmul %28, %21, %cst_32 {dimension_numbers = #tpu.dot_dimension_numbers<[2], [2], [1], [1], [0, 0, 0, 1, 1, 1], [0], [0]>} : vector<4x8x8xf32>, vector<4x8x8xf32>, vector<4x8x8xf32> -> vector<4x8x8xf32>
    "tpu.trace_stop"() : () -> ()
    %c0_33 = arith.constant 0 : index
    %c0_34 = arith.constant 0 : index
    %37 = vector.load %arg1[%c0_33, %c0_34] : memref<8x8xf32, #tpu.memory_space<vmem>>, vector<8x8xf32>
    %38 = vector.shape_cast %37 : vector<8x8xf32> to vector<1x8x8xf32>
    %39 = vector.broadcast %38 : vector<1x8x8xf32> to vector<4x8x8xf32>
    %40 = arith.addf %36, %39 : vector<4x8x8xf32>
    %cst_35 = arith.constant dense<0xFF800000> : vector<4x8xf32>
    %41 = vector.multi_reduction <maximumf>, %40, %cst_35 [2] : vector<4x8x8xf32> to vector<4x8xf32>
    %42 = vector.shape_cast %41 : vector<4x8xf32> to vector<4x8x1xf32>
    %43 = vector.broadcast %42 : vector<4x8x1xf32> to vector<4x8x8xf32>
    %44 = arith.subf %40, %43 : vector<4x8x8xf32>
    %45 = math.exp %44 : vector<4x8x8xf32>
    %cst_36 = arith.constant dense<0.000000e+00> : vector<4x8xf32>
    %46 = vector.multi_reduction <add>, %45, %cst_36 [2] : vector<4x8x8xf32> to vector<4x8xf32>
    %47 = vector.shape_cast %46 : vector<4x8xf32> to vector<4x8x1xf32>
    %48 = tpu.reciprocal %47 : vector<4x8x1xf32> -> vector<4x8x1xf32>
    %49 = vector.broadcast %48 : vector<4x8x1xf32> to vector<4x8x8xf32>
    %50 = arith.mulf %45, %49 : vector<4x8x8xf32>
    "tpu.trace_start"() <{level = 10 : i32, message = "hrs,hsp->hrp"}> : () -> ()
    %cst_37 = arith.constant dense<0.000000e+00> : vector<4x8x8xf32>
    %51 = tpu.matmul %50, %35, %cst_37 {dimension_numbers = #tpu.dot_dimension_numbers<[2], [1], [1], [2], [0, 0, 0, 1, 1, 2], [0], [0]>} : vector<4x8x8xf32>, vector<4x8x8xf32>, vector<4x8x8xf32> -> vector<4x8x8xf32>
    "tpu.trace_stop"() : () -> ()
    %c0_38 = arith.constant 0 : index
    %c0_39 = arith.constant 0 : index
    %c0_40 = arith.constant 0 : index
    %52 = vector.load %arg7[%c0_38, %c0_39, %c0_40] : memref<4x8x32xf32, #tpu.memory_space<vmem>>, vector<4x8x32xf32>
    "tpu.trace_start"() <{level = 10 : i32, message = "hrp,hpe->hre"}> : () -> ()
    %cst_41 = arith.constant dense<0.000000e+00> : vector<4x8x32xf32>
    %53 = tpu.matmul %51, %52, %cst_41 {dimension_numbers = #tpu.dot_dimension_numbers<[2], [1], [1], [2], [0, 0, 0, 1, 1, 2], [0], [0]>} : vector<4x8x8xf32>, vector<4x8x32xf32>, vector<4x8x32xf32> -> vector<4x8x32xf32>
    "tpu.trace_stop"() : () -> ()
    %cst_42 = arith.constant dense<0.000000e+00> : vector<8x32xf32>
    %54 = vector.multi_reduction <add>, %53, %cst_42 [0] : vector<4x8x32xf32> to vector<8x32xf32>
    %c0_43 = arith.constant 0 : index
    %c0_44 = arith.constant 0 : index
    %55 = vector.load %arg8[%c0_43, %c0_44] : memref<1x32xf32, #tpu.memory_space<vmem>>, vector<1x32xf32>
    %56 = vector.broadcast %55 : vector<1x32xf32> to vector<8x32xf32>
    %57 = arith.addf %54, %56 : vector<8x32xf32>
    %58 = vector.shape_cast %57 : vector<8x32xf32> to vector<1x8x32xf32>
    %c0_45 = arith.constant 0 : index
    %c0_46 = arith.constant 0 : index
    %c0_47 = arith.constant 0 : index
    %59 = vector.load %arg9[%c0_45, %c0_46, %c0_47] : memref<1x8x32xf32, #tpu.memory_space<vmem>>, vector<1x8x32xf32>
    tpu.vector_store %arg9[%c0_45, %c0_46, %c0_47], %58 {strides = array<i32>} : memref<1x8x32xf32, #tpu.memory_space<vmem>>, vector<1x8x32xf32>,
    return
  }
  func.func @transform_0(%arg0: i32) -> (i32, i32) {
    %c0_i32 = arith.constant 0 : i32
    %c0_i32_0 = arith.constant 0 : i32
    %c0_i32_1 = arith.constant 0 : i32
    return %c0_i32, %c0_i32_0 : i32, i32
  }
  func.func @transform_1(%arg0: i32) -> (i32, i32, i32) {
    %c0_i32 = arith.constant 0 : i32
    %c0_i32_0 = arith.constant 0 : i32
    %c0_i32_1 = arith.constant 0 : i32
    return %arg0, %c0_i32, %c0_i32_0 : i32, i32, i32
  }
  func.func @transform_2(%arg0: i32) -> (i32, i32, i32) {
    %c0_i32 = arith.constant 0 : i32
    %c0_i32_0 = arith.constant 0 : i32
    %c0_i32_1 = arith.constant 0 : i32
    return %arg0, %c0_i32, %c0_i32_0 : i32, i32, i32
  }
  func.func @transform_3(%arg0: i32) -> (i32, i32, i32) {
    %c0_i32 = arith.constant 0 : i32
    %c0_i32_0 = arith.constant 0 : i32
    %c0_i32_1 = arith.constant 0 : i32
    return %arg0, %c0_i32, %c0_i32_0 : i32, i32, i32
  }
  func.func @transform_4(%arg0: i32) -> (i32, i32, i32, i32) {
    %c0_i32 = arith.constant 0 : i32
    %c0_i32_0 = arith.constant 0 : i32
    %c0_i32_1 = arith.constant 0 : i32
    %c0_i32_2 = arith.constant 0 : i32
    %c0_i32_3 = arith.constant 0 : i32
    return %c0_i32, %c0_i32_0, %c0_i32_1, %c0_i32_2 : i32, i32, i32, i32
  }
  func.func @transform_5(%arg0: i32) -> (i32, i32, i32, i32) {
    %c0_i32 = arith.constant 0 : i32
    %c0_i32_0 = arith.constant 0 : i32
    %c0_i32_1 = arith.constant 0 : i32
    %c0_i32_2 = arith.constant 0 : i32
    %c0_i32_3 = arith.constant 0 : i32
    return %c0_i32, %c0_i32_0, %c0_i32_1, %c0_i32_2 : i32, i32, i32, i32
  }
  func.func @transform_6(%arg0: i32) -> (i32, i32, i32) {
    %c0_i32 = arith.constant 0 : i32
    %c0_i32_0 = arith.constant 0 : i32
    %c0_i32_1 = arith.constant 0 : i32
    %c0_i32_2 = arith.constant 0 : i32
    return %c0_i32, %c0_i32_0, %c0_i32_1 : i32, i32, i32
  }
  func.func @transform_7(%arg0: i32) -> (i32, i32) {
    %c0_i32 = arith.constant 0 : i32
    %c0_i32_0 = arith.constant 0 : i32
    %c0_i32_1 = arith.constant 0 : i32
    return %c0_i32, %c0_i32_0 : i32, i32
  }
  func.func @transform_8(%arg0: i32) -> (i32, i32, i32) {
    %c0_i32 = arith.constant 0 : i32
    %c0_i32_0 = arith.constant 0 : i32
    %c0_i32_1 = arith.constant 0 : i32
    return %arg0, %c0_i32, %c0_i32_0 : i32, i32, i32
  }
}

</mosaic_0001>

<bundles_post_ra>
// kernel: multi_head_attention.1
= control target key start
LH: loop header
LB: loop body
LE: loop exit
PB: predicated region body
PF: predicated region fallthrough
CT: control target
= control target key end

     0   :  { %13 = vsyncpa [#allocation3], 0  ;;  %s3362_s0 = inlined_call_operand.vmem [shape: f32[8,8], index: 0, kind: input, shape index: {}]   ;;  %s3363_s1 = inlined_call_operand.vmem [shape: f32[2,8,32], index: 1, kind: input, shape index: {}]   ;;  %s3364_s2 = inlined_call_operand.vmem [shape: f32[2,8,32], index: 2, kind: input, shape index: {}]   ;;  %s3365_s3 = inlined_call_operand.vmem [shape: f32[2,8,32], index: 3, kind: input, shape index: {}]   ;;  %s3366_s4 = inlined_call_operand.vmem [shape: f32[3,4,32,8], index: 4, kind: input, shape index: {}]   ;;  %s3367_s5 = inlined_call_operand.vmem [shape: f32[3,4,1,8], index: 5, kind: input, shape index: {}]   ;;  %s3368_s6 = inlined_call_operand.vmem [shape: f32[4,8,32], index: 6, kind: input, shape index: {}]   ;;  %s3369_s7 = inlined_call_operand.vmem [shape: f32[1,32], index: 7, kind: input, shape index: {}]   ;;  %s3370_s8 = inlined_call_operand.hbm [shape: f32[2,8,32], index: 8, kind: output, shape index: {}]  }
   0x1   :  { %15 = vsyncpa [#allocation3 + $0x1], 0  ;;  %s2911_s27 = smov 0   ;;  %s2913_s28 = smov 0  }
   0x2   :  { %s2915_s29 = smov 0   ;;  %s2917_s30 = smov 0  }
   0x3 LB: > { %s2932_s9 = sadd.s32 4294967295, %s2861_s30   ;;  %s2375_s10 = sadd.s32 4294967294, %s2861_s30   ;;  %s2861_s30 = sphi %s2917_s30, %s3376_s30   ;;  %s2857_s29 = sphi %s2915_s29, %s3375_s29   ;;  %s2853_s28 = sphi %s2913_s28, %s3374_s28   ;;  %s2849_s27 = sphi %s2911_s27, %s3373_s27  }
   0x4   : > { %s2936_s11 = sadd.s32 1, %s2861_s30   ;;  %s211_s12 = sadd.s32 1, %s2857_s29 }
   0x5   : > { %s208_s13 = ssub.s32 %s2861_s30, %s2936_s11  ;;  %p221_p0 = scmp.ne.s32.totalorder %s2857_s29, %s2853_s28 }
   0x6   : > { %p209_p1 = scmp.eq.s32.totalorder %s208_s13, 0  ;;  %p222_p2 = scmp.eq.s32.totalorder %s2932_s9, 1 }
   0x7   : > { %p227_p3 = scmp.ne.s32.totalorder %s2853_s28, %s2849_s27  ;;  %p228_p4 = scmp.eq.s32.totalorder %s2375_s10, 1 }
   0x8   : > { %s2947_s14 = scalar_select %p209_p1, %s2857_s29, %s211_s12  }
   0x9   : > { %p2949_p5 = por %p222_p2, %p221_p0  ;;  %p2953_p6 = por %p228_p4, %p227_p3 }
   0xa   : > { %p2378_p7 = scmp.ge.s32.totalorder %s2861_s30, 1  ;;  %p282_p8 = scmp.lt.s32.totalorder %s2861_s30, 3 }
   0xc   : > { %p283_p9 = pnand %p2378_p7, %p282_p8 }
   0xd   : > { %p323_p10 = scmp.lt.s32.totalorder (!%p283_p9), %s2932_s9, 1  ;;  %s320_s20 = sand.u32 (!%p283_p9), 1, %s2853_s28  }
   0xe   : > { %286 = sbr.rel (%p283_p9) target bundleno = 1168 (0x490), region = 52  ;;  %s2379_s21 = sshll.u32 (!%p283_p9), %s320_s20, 3 }
   0xf   : > { %s2465_s24 = sshll.u32 (!%p283_p9), %s2932_s9, 7  ;;  %s2279_s18 = scalar_lea.sflag (!%p283_p9), [#allocation3], %s320_s20 }
  0x10   : > { %s2290_s13 = scalar_lea.hbm (!%p283_p9), %s3370_s8, %s2465_s24 }
  0x13   : > { %v341_v0 = vld [vmem:[%s3366_s4 + $0x18] sm:$0xff]  ;;  %v2863_v2 = vmov 0.0   ;;  %v340_v3 = vld [vmem:[%s3366_s4 + $0x10] sm:$0xff]  ;;  %s324_s25 = scalar_select %p323_p10, %s2932_s9, 1  ;;  %v339_v5 = vld [vmem:[%s3366_s4 + $0x8] sm:$0xff]  ;;  %vm382_vm0 = vcmask 261120  }
  0x14   : > { %v345_v1 = vld [vmem:[%s3366_s4 + $0x38] sm:$0xff]  ;;  %2552 = vmatprep.subr.mxu0 %v2863_v2  ;;  %2563 = vmatprep.subr.mxu1 %v2863_v2  ;;  %v344_v4 = vld [vmem:[%s3366_s4 + $0x30] sm:$0xff]  ;;  %v343_v6 = vld [vmem:[%s3366_s4 + $0x28] sm:$0xff]  ;;  %vm2864_vm1 = vmmov 0   ;;  %vm1325_vm2 = vcmask 64512  }
  0x15   : > { %2553 = vmatpush3.msra.mxu0 %v341_v0  ;;  %2564 = vmatpush3.msra.mxu1 %v345_v1  ;;  %s2983_s17 = sshll.u32 %s324_s25, 3  ;;  %v338_v7 = vld [vmem:[%s3366_s4] sm:$0xff]  ;;  %v349_v10 = vld [vmem:[%s3366_s4 + $0x58] sm:$0xff]  ;;  %v348_v12 = vld [vmem:[%s3366_s4 + $0x50] sm:$0xff]  ;;  %s322_s25 = scalar_lea.vmem [#allocation2], %s2379_s21 }
  0x16   : > { %2554 = vmatprep.subr.mxu0 %v2863_v2  ;;  %2565 = vmatprep.subr.mxu1 %v2863_v2  ;;  %s326_s22 = scalar_lea.vmem %s3363_s1, %s2983_s17  ;;  %v342_v8 = vld [vmem:[%s3366_s4 + $0x20] sm:$0xff]  ;;  %v353_v11 = vld [vmem:[%s3366_s4 + $0x78] sm:$0xff]  ;;  %v352_v13 = vld [vmem:[%s3366_s4 + $0x70] sm:$0xff]  ;;  %s330_s19 = scalar_lea.vmem %s3364_s2, %s2983_s17 }
  0x17   : > { %2555 = vmatpush3.msra.mxu0 %v340_v3  ;;  %2566 = vmatpush3.msra.mxu1 %v344_v4  ;;  %v335_v9 = vld [vmem:[%s326_s22] sm:$0xff]  ;;  %v347_v14 = vld [vmem:[%s3366_s4 + $0x48] sm:$0xff]  ;;  %v2394_v18 = vld [vmem:[%s3366_s4 + $0x98] sm:$0xff]  ;;  %s334_s12 = scalar_lea.vmem %s3365_s3, %s2983_s17  ;;  %s2292_s26 = sshll.u32 %s322_s25, 4  ;;  %s2293_s26 = int_to_ptr.vmem [resolvable:$true] %s2292_s26 }
  0x18   : > { %2556 = vmatprep.subr.mxu0 %v2863_v2  ;;  %2567 = vmatprep.subr.mxu1 %v2863_v2  ;;  %v351_v15 = vld [vmem:[%s3366_s4 + $0x68] sm:$0xff]  ;;  %v346_v16 = vld [vmem:[%s3366_s4 + $0x40] sm:$0xff]  ;;  %v2398_v19 = vld [vmem:[%s3366_s4 + $0xb8] sm:$0xff]  ;;  %s2865_s17 = smov [#allocation2]  }
  0x19   : > { %2557 = vmatpush3.msra.mxu0 %v339_v5  ;;  %2568 = vmatpush3.msra.mxu1 %v343_v6  ;;  %v350_v17 = vld [vmem:[%s3366_s4 + $0x60] sm:$0xff]  ;;  %v2393_v20 = vld [vmem:[%s3366_s4 + $0x90] sm:$0xff]  ;;  %v2392_v22 = vld [vmem:[%s3366_s4 + $0x88] sm:$0xff]  ;;  %s2805_s9 = sshll.u32 %s2865_s17, 4  ;;  %s2806_s9 = int_to_ptr.vmem [resolvable:$false] %s2805_s9 }
  0x1a   : > { %2558 = vmatprep.subr.mxu0 %v2863_v2  ;;  %2569 = vmatprep.subr.mxu1 %v2863_v2  ;;  %v2397_v21 = vld [vmem:[%s3366_s4 + $0xb0] sm:$0xff]  ;;  %v2396_v23 = vld [vmem:[%s3366_s4 + $0xa8] sm:$0xff]  ;;  %v2391_v24 = vld [vmem:[%s3366_s4 + $0x80] sm:$0xff]  ;;  %s2807_s21 = scalar_lea.vmem %s2806_s9, 256  ;;  %p2808_p0 = scmp.lt.s32.totalorder %s2293_s26, %s2806_s9 }
  0x1b   : > { %2559 = vmatpush3.msra.mxu0 %v338_v7  ;;  %2560 = vmatprep.mubr.msk.f32.mxu0 %vm2864_vm1, %v2863_v2  ;;  %v2395_v25 = vld [vmem:[%s3366_s4 + $0xa0] sm:$0xff]  ;;  %v2402_v27 = vld [vmem:[%s3366_s4 + $0xd8] sm:$0xff]  ;;  %v2401_v29 = vld [vmem:[%s3366_s4 + $0xd0] sm:$0xff] }
  0x1c   : > { %2570 = vmatpush3.msra.mxu1 %v342_v8  ;;  %2561 = vmatmul.mubr.msk.f32.vlgmr.msra.gmra.mxu0 %vm382_vm0, %v335_v9  ;;  %v336_v26 = vld [vmem:[%s330_s19] sm:$0xff]  ;;  %v2406_v28 = vld [vmem:[%s3366_s4 + $0xf8] sm:$0xff]  ;;  %v2405_v30 = vld [vmem:[%s3366_s4 + $0xf0] sm:$0xff]  ;;  %s2801_s19 = scalar_lea.vmem %s2293_s26, 128 }
  0x1d   : > { %2571 = vmatprep.mubr.msk.f32.mxu1 %vm2864_vm1, %v2863_v2  ;;  %2574 = vmatprep.subr.mxu0 %v2863_v2  ;;  %v2400_v31 = vld [vmem:[%s3366_s4 + $0xc8] sm:$0xff]  ;;  %v2399_v33 = vld [vmem:[%s3366_s4 + $0xc0] sm:$0xff]  ;;  %v2422_v35 = vld [vmem:[%s3366_s4 + $0x118] sm:$0xff]  ;;  %p2802_p11 = scmp.ne.s32.totalorder %s2293_s26, %s2801_s19  ;;  %p2809_p1 = scmp.lt.s32.totalorder %s2807_s21, %s2801_s19 }
  0x1e   : > { %2585 = vmatprep.subr.mxu1 %v2863_v2  ;;  %2572 = vmatmul.mubr.msk.f32.vlgmr.msra.gmra.mxu1 %vm382_vm0, %v335_v9  ;;  %v2404_v32 = vld [vmem:[%s3366_s4 + $0xe8] sm:$0xff]  ;;  %v2403_v34 = vld [vmem:[%s3366_s4 + $0xe0] sm:$0xff]  ;;  %v2421_v36 = vld [vmem:[%s3366_s4 + $0x110] sm:$0xff] }
  0x1f   : > { %2575 = vmatpush3.msra.mxu0 %v349_v10  ;;  %2586 = vmatpush3.msra.mxu1 %v353_v11  ;;  %v2426_v37 = vld [vmem:[%s3366_s4 + $0x138] sm:$0xff]  ;;  %v2420_v38 = vld [vmem:[%s3366_s4 + $0x108] sm:$0xff]  ;;  %v2425_v39 = vld [vmem:[%s3366_s4 + $0x130] sm:$0xff]  ;;  %p2803_p12 = pnand %p2802_p11, %p2949_p5  ;;  %p2810_p2 = por %p2809_p1, %p2808_p0 }
  0x20   : > { %2576 = vmatprep.subr.mxu0 %v2863_v2  ;;  %2587 = vmatprep.subr.mxu1 %v2863_v2  ;;  %v2419_v40 = vld [vmem:[%s3366_s4 + $0x100] sm:$0xff]  ;;  %v2424_v42 = vld [vmem:[%s3366_s4 + $0x128] sm:$0xff]  ;;  %v2430_v43 = vld [vmem:[%s3366_s4 + $0x158] sm:$0xff] }
  0x21   : > { %2577 = vmatpush3.msra.mxu0 %v348_v12  ;;  %2588 = vmatpush3.msra.mxu1 %v352_v13  ;;  %v337_v41 = vld [vmem:[%s334_s12] sm:$0xff]  ;;  %v2429_v45 = vld [vmem:[%s3366_s4 + $0x150] sm:$0xff]  ;;  %v2428_v46 = vld [vmem:[%s3366_s4 + $0x148] sm:$0xff]  ;;  %p2804_p13 = pneg %p2803_p12 }
  0x22   : > { %2578 = vmatprep.subr.mxu0 %v2863_v2  ;;  %2589 = vmatprep.subr.mxu1 %v2863_v2  ;;  %v2423_v44 = vld [vmem:[%s3366_s4 + $0x120] sm:$0xff]  ;;  %v2434_v47 = vld [vmem:[%s3366_s4 + $0x178] sm:$0xff]  ;;  %v2433_v49 = vld [vmem:[%s3366_s4 + $0x170] sm:$0xff] }
  0x23   : > { %2579 = vmatpush3.msra.mxu0 %v347_v14  ;;  %2590 = vmatpush3.msra.mxu1 %v351_v15  ;;  %v2427_v48 = vld [vmem:[%s3366_s4 + $0x140] sm:$0xff]  ;;  %v2432_v50 = vld [vmem:[%s3366_s4 + $0x168] sm:$0xff]  ;;  %p2811_p3 = pnand %p2810_p2, %p2804_p13 }
  0x24   : > { %2580 = vmatprep.subr.mxu0 %v2863_v2  ;;  %2591 = vmatprep.subr.mxu1 %v2863_v2  ;;  %v2431_v51 = vld [vmem:[%s3366_s4 + $0x160] sm:$0xff] }
  0x25   : > { %2581 = vmatpush3.msra.mxu0 %v346_v16  ;;  %2582 = vmatprep.mubr.msk.f32.mxu0 %vm2864_vm1, %v2863_v2  ;;  %v2383_v52 = vld [vmem:[%s3367_s5] ss:$0 sm:$0xff]  ;;  %v2384_v54 = vld [vmem:[%s3367_s5 + $0x1] ss:$0 sm:$0xff]  ;;  %v2411_v0 = vld [vmem:[%s3367_s5 + $0x4] ss:$0 sm:$0xff] }
  0x26   : > { %2592 = vmatpush3.msra.mxu1 %v350_v17  ;;  %2583 = vmatmul.mubr.msk.f32.vlgmr.msra.gmra.mxu0 %vm382_vm0, %v335_v9  ;;  %v2412_v1 = vld [vmem:[%s3367_s5 + $0x5] ss:$0 sm:$0xff]  ;;  %v2385_v3 = vld [vmem:[%s3367_s5 + $0x2] ss:$0 sm:$0xff]  ;;  %v2386_v4 = vld [vmem:[%s3367_s5 + $0x3] ss:$0 sm:$0xff] }
  0x27   : > { %2593 = vmatprep.mubr.msk.f32.mxu1 %vm2864_vm1, %v2863_v2  ;;  %2596 = vmatprep.subr.mxu0 %v2863_v2  ;;  %v2413_v13 = vld [vmem:[%s3367_s5 + $0x6] ss:$0 sm:$0xff]  ;;  %v2414_v15 = vld [vmem:[%s3367_s5 + $0x7] ss:$0 sm:$0xff] }
  0x28   : > { %2607 = vmatprep.subr.mxu1 %v2863_v2  ;;  %2594 = vmatmul.mubr.msk.f32.vlgmr.msra.gmra.mxu1 %vm382_vm0, %v335_v9 }
  0x29   : > { %2597 = vmatpush3.msra.mxu0 %v2394_v18  ;;  %2608 = vmatpush3.msra.mxu1 %v2398_v19 }
  0x2a   : > { %2598 = vmatprep.subr.mxu0 %v2863_v2  ;;  %2609 = vmatprep.subr.mxu1 %v2863_v2 }
  0x2b   : > { %2599 = vmatpush3.msra.mxu0 %v2393_v20  ;;  %2610 = vmatpush3.msra.mxu1 %v2397_v21  ;;  %v2439_v21 = vld [vmem:[%s3367_s5 + $0x8] ss:$0 sm:$0xff] }
  0x2c   : > { %2600 = vmatprep.subr.mxu0 %v2863_v2  ;;  %2611 = vmatprep.subr.mxu1 %v2863_v2 }
  0x2d   : > { %2601 = vmatpush3.msra.mxu0 %v2392_v22  ;;  %2612 = vmatpush3.msra.mxu1 %v2396_v23 }
  0x2e   : > { %2602 = vmatprep.subr.mxu0 %v2863_v2  ;;  %2613 = vmatprep.subr.mxu1 %v2863_v2 }
  0x2f   : > { %2603 = vmatpush3.msra.mxu0 %v2391_v24  ;;  %2604 = vmatprep.mubr.msk.f32.mxu0 %vm2864_vm1, %v2863_v2 }
  0x30   : > { %2614 = vmatpush3.msra.mxu1 %v2395_v25  ;;  %2615 = vmatprep.mubr.msk.f32.mxu1 %vm2864_vm1, %v2863_v2  ;;  %v2440_v25 = vld [vmem:[%s3367_s5 + $0x9] ss:$0 sm:$0xff] }
  0x31   : > { %2605 = vmatmul.mubr.msk.f32.vlgmr.msra.gmra.mxu0 %vm382_vm0, %v336_v26  ;;  %2616 = vmatmul.mubr.msk.f32.vlgmr.msra.gmra.mxu1 %vm382_vm0, %v336_v26 }
  0x32   : > { %2618 = vmatprep.subr.mxu0 %v2863_v2  ;;  %2629 = vmatprep.subr.mxu1 %v2863_v2 }
  0x33   : > { %2619 = vmatpush3.msra.mxu0 %v2402_v27  ;;  %2630 = vmatpush3.msra.mxu1 %v2406_v28 }
  0x34   : > { %2620 = vmatprep.subr.mxu0 %v2863_v2  ;;  %2631 = vmatprep.subr.mxu1 %v2863_v2 }
  0x35   : > { %2621 = vmatpush3.msra.mxu0 %v2401_v29  ;;  %2632 = vmatpush3.msra.mxu1 %v2405_v30 }
  0x36   : > { %2622 = vmatprep.subr.mxu0 %v2863_v2  ;;  %2633 = vmatprep.subr.mxu1 %v2863_v2 }
  0x37   : > { %2623 = vmatpush3.msra.mxu0 %v2400_v31  ;;  %2626 = vmatprep.mubr.msk.f32.mxu0 %vm2864_vm1, %v2863_v2 }
  0x38   : > { %2624 = vmatprep.subr.mxu0 %v2863_v2  ;;  %2634 = vmatpush3.msra.mxu1 %v2404_v32 }
  0x39   : > { %2625 = vmatpush3.msra.mxu0 %v2399_v33  ;;  %2635 = vmatprep.subr.mxu1 %v2863_v2  ;;  %v1324_v33 = vld [vmem:[%s3362_s0] sm:$0xff] }
  0x3a   : > { %2627 = vmatmul.mubr.msk.f32.vlgmr.msra.gmra.mxu0 %vm382_vm0, %v336_v26  ;;  %2636 = vmatpush3.msra.mxu1 %v2403_v34 }
  0x3b   : > { %2637 = vmatprep.mubr.msk.f32.mxu1 %vm2864_vm1, %v2863_v2  ;;  %2640 = vmatprep.subr.mxu0 %v2863_v2 }
  0x3c   : > { %2638 = vmatmul.mubr.msk.f32.vlgmr.msra.gmra.mxu1 %vm382_vm0, %v336_v26  ;;  %2641 = vmatpush3.msra.mxu0 %v2422_v35 }
  0x3d   : > { %2642 = vmatprep.subr.mxu0 %v2863_v2  ;;  %2651 = vmatprep.subr.mxu1 %v2863_v2 }
  0x3e   : > { %2643 = vmatpush3.msra.mxu0 %v2421_v36  ;;  %2652 = vmatpush3.msra.mxu1 %v2426_v37 }
  0x3f   : > { %2644 = vmatprep.subr.mxu0 %v2863_v2  ;;  %2653 = vmatprep.subr.mxu1 %v2863_v2 }
  0x40   : > { %2645 = vmatpush3.msra.mxu0 %v2420_v38  ;;  %2654 = vmatpush3.msra.mxu1 %v2425_v39 }
  0x41   : > { %2646 = vmatprep.subr.mxu0 %v2863_v2  ;;  %2648 = vmatprep.mubr.msk.f32.mxu0 %vm2864_vm1, %v2863_v2 }
  0x42   : > { %2647 = vmatpush3.msra.mxu0 %v2419_v40  ;;  %2655 = vmatprep.subr.mxu1 %v2863_v2 }
  0x43   : > { %2662 = vmatprep.subr.mxu0 %v2863_v2  ;;  %2649 = vmatmul.mubr.msk.f32.vlgmr.msra.gmra.mxu0 %vm382_vm0, %v337_v41 }
  0x44   : > { %2656 = vmatpush3.msra.mxu1 %v2424_v42  ;;  %2663 = vmatpush3.msra.mxu0 %v2430_v43 }
  0x45   : > { %2657 = vmatprep.subr.mxu1 %v2863_v2  ;;  %2664 = vmatprep.subr.mxu0 %v2863_v2 }
  0x46   : > { %2658 = vmatpush3.msra.mxu1 %v2423_v44  ;;  %2665 = vmatpush3.msra.mxu0 %v2429_v45 }
  0x47   : > { %2659 = vmatprep.mubr.msk.f32.mxu1 %vm2864_vm1, %v2863_v2  ;;  %2666 = vmatprep.subr.mxu0 %v2863_v2 }
  0x48   : > { %2673 = vmatprep.subr.mxu1 %v2863_v2  ;;  %2660 = vmatmul.mubr.msk.f32.vlgmr.msra.gmra.mxu1 %vm382_vm0, %v337_v41 }
  0x49   : > { %2670 = vmatprep.mubr.msk.f32.mxu0 %vm2864_vm1, %v2863_v2  ;;  %2681 = vmatprep.mubr.msk.f32.mxu1 %vm2864_vm1, %v2863_v2 }
  0x4a   : > { %2667 = vmatpush3.msra.mxu0 %v2428_v46  ;;  %2674 = vmatpush3.msra.mxu1 %v2434_v47 }
  0x4b   : > { %2668 = vmatprep.subr.mxu0 %v2863_v2  ;;  %2675 = vmatprep.subr.mxu1 %v2863_v2 }
  0x4c   : > { %2669 = vmatpush3.msra.mxu0 %v2427_v48  ;;  %2676 = vmatpush3.msra.mxu1 %v2433_v49 }
  0x4d   : > { %2677 = vmatprep.subr.mxu1 %v2863_v2  ;;  %2684 = vmatprep.subr.mxu0 %v2863_v2 }
  0x4e   : > { %2671 = vmatmul.mubr.msk.f32.vlgmr.msra.gmra.mxu0 %vm382_vm0, %v337_v41  ;;  %2678 = vmatpush3.msra.mxu1 %v2432_v50 }
  0x4f   : > { %2679 = vmatprep.subr.mxu1 %v2863_v2  ;;  %2686 = vmatprep.mubr.msk.f32.mxu0 %vm2864_vm1, %v2863_v2 }
  0x50   : > { %2680 = vmatpush3.msra.mxu1 %v2431_v51 }
  0x51   : > { %2689 = vmatprep.subr.mxu1 %v2863_v2  ;;  %2682 = vmatmul.mubr.msk.f32.vlgmr.msra.gmra.mxu1 %vm382_vm0, %v337_v41 }
  0x52   : > { %2691 = vmatprep.mubr.msk.f32.mxu1 %vm2864_vm1, %v2863_v2 }
  0xdc   : > { %v452_v53 = vpop.f32.mrf.mxu0 }
  0xdd   : > { %v453_v55 = vadd.f32 %v2383_v52, %v452_v53 }
  0xde   : > { %v2562_v56 = vpop.f32.mrf.mxu0  ;;  %v522_v57 = vpop.f32.mrf.mxu1 }
  0xdf   : > { %v523_v58 = vadd.f32 %v2384_v54, %v522_v57  ;;  %2685 = vmatpush3.xpose.msk.msra.mxu0 %vm1325_vm2, %v453_v55 }
  0xe0   : > { %v2573_v59 = vpop.f32.mrf.mxu1  ;;  %2694 = vmatprep.subr.mxu0 %v2863_v2 }
  0xe1   : > { %2690 = vmatpush3.xpose.msk.msra.mxu1 %vm1325_vm2, %v523_v58 }
  0xe2   : > { %2699 = vmatprep.subr.mxu1 %v2863_v2 }
  0xe6   : > { %v592_v60 = vpop.f32.mrf.mxu0 }
  0xe7   : > { %v593_v9 = vadd.f32 %v2385_v3, %v592_v60 }
  0xe8   : > { %v2584_v61 = vpop.f32.mrf.mxu0  ;;  %v662_v62 = vpop.f32.mrf.mxu1 }
  0xe9   : > { %v663_v10 = vadd.f32 %v2386_v4, %v662_v62 }
  0xea   : > { %v2595_v63 = vpop.f32.mrf.mxu1 }
  0xf1   : > { %v781_v5 = vpop.f32.mrf.mxu0  ;;  %v851_v6 = vpop.f32.mrf.mxu1 }
  0xf2   : > { %v782_v7 = vadd.f32 %v2411_v0, %v781_v5  ;;  %v852_v8 = vadd.f32 %v2412_v1, %v851_v6 }
  0xf3   : > { %v2606_v11 = vpop.f32.mrf.mxu0  ;;  %v2617_v12 = vpop.f32.mrf.mxu1 }
  0xf4   : > { %2687 = vmatmul.mubr.msk.f32.vlgmr.msra.gmra.mxu0 %vm1325_vm2, %v782_v7  ;;  %2692 = vmatmul.mubr.msk.f32.vlgmr.msra.gmra.mxu1 %vm1325_vm2, %v852_v8 }
  0xf5   : > { %2695 = vmatpush3.xpose.msk.msra.mxu0 %vm1325_vm2, %v593_v9  ;;  %2700 = vmatpush3.xpose.msk.msra.mxu1 %vm1325_vm2, %v663_v10  ;;  %v2441_v10 = vld [vmem:[%s3367_s5 + $0xa] ss:$0 sm:$0xff] }
  0xf6   : > { %2696 = vmatprep.mubr.msk.f32.mxu0 %vm2864_vm1, %v2863_v2  ;;  %2701 = vmatprep.mubr.msk.f32.mxu1 %vm2864_vm1, %v2863_v2 }
  0xf7   : > { %2704 = vmatprep.subr.mxu0 %v2863_v2  ;;  %2709 = vmatprep.subr.mxu1 %v2863_v2 }
  0xfa   : > { %v921_v14 = vpop.f32.mrf.mxu0 }
  0xfb   : > { %v922_v16 = vadd.f32 %v2413_v13, %v921_v14 }
  0xfc   : > { %v2628_v17 = vpop.f32.mrf.mxu0  ;;  %v991_v18 = vpop.f32.mrf.mxu1 }
  0xfd   : > { %v992_v19 = vadd.f32 %v2414_v15, %v991_v18  ;;  %2697 = vmatmul.mubr.msk.f32.vlgmr.msra.gmra.mxu0 %vm1325_vm2, %v922_v16  ;;  %v2442_v15 = vld [vmem:[%s3367_s5 + $0xb] ss:$0 sm:$0xff] }
  0xfe   : > { %v2639_v20 = vpop.f32.mrf.mxu1  ;;  %2706 = vmatprep.mubr.msk.f32.mxu0 %vm2864_vm1, %v2863_v2 }
  0xff   : > { %2702 = vmatmul.mubr.msk.f32.vlgmr.msra.gmra.mxu1 %vm1325_vm2, %v992_v19 }
 0x100   : > { %2711 = vmatprep.mubr.msk.f32.mxu1 %vm2864_vm1, %v2863_v2 }
 0x103   : > { %v1110_v22 = vpop.f32.mrf.mxu0 }
 0x104   : > { %v1111_v23 = vadd.f32 %v2439_v21, %v1110_v22 }
 0x105   : > { %v2650_v24 = vpop.f32.mrf.mxu0 }
 0x106   : > { %2705 = vmatpush3.msra.mxu0 %v1111_v23  ;;  %v1966_v23 = vld [vmem:[%s3368_s6] sm:$0xff]  ;;  %v1967_v24 = vld [vmem:[%s3368_s6 + $0x8] sm:$0xff] }
 0x107   : > { %2714 = vmatprep.subr.mxu0 %v2863_v2 }
 0x108   : > { %v1180_v26 = vpop.f32.mrf.mxu1 }
 0x109   : > { %v1181_v27 = vadd.f32 %v2440_v25, %v1180_v26  ;;  %v1968_v25 = vld [vmem:[%s3368_s6 + $0x10] sm:$0xff] }
 0x10a   : > { %v2661_v28 = vpop.f32.mrf.mxu1 }
 0x10b   : > { %2710 = vmatpush3.msra.mxu1 %v1181_v27  ;;  %v1969_v28 = vld [vmem:[%s3368_s6 + $0x18] sm:$0xff] }
 0x10c   : > { %2719 = vmatprep.subr.mxu1 %v2863_v2 }
 0x10e   : > { %v3261_v29 = vpop.f32.mrf.mxu0 }
 0x10f   : > { %v1251_v14 = vadd.f32 %v2441_v10, %v3261_v29 }
 0x110   : > { %v2672_v30 = vpop.f32.mrf.mxu0 }
 0x111   : > { %v3263_v31 = vpop.f32.mrf.mxu1 }
 0x112   : > { %v1321_v18 = vadd.f32 %v2442_v15, %v3263_v31 }
 0x113   : > { %v2683_v32 = vpop.f32.mrf.mxu1 }
 0x1b4   : > { %v1398_v34 = vpop.f32.mrf.mxu0  ;;  %v1474_v35 = vpop.f32.mrf.mxu1 }
 0x1b5   : > { %v1399_v36 = vadd.f32 %v1398_v34, %v1324_v33  ;;  %v1475_v37 = vadd.f32 %v1474_v35, %v1324_v33 }
 0x1b6   : > { %v2688_v38 = vpop.f32.mrf.mxu0  ;;  %v2693_v39 = vpop.f32.mrf.mxu1 }
 0x1b7   : > { %v1630_v40 = vsel %vm1325_vm2, %v1399_v36, -inf  ;;  %v1633_v41 = vsel %vm1325_vm2, %v1475_v37, -inf }
 0x1b8   : > { %1631 = vmax.xlane.f32.xlu0 %v1630_v40 }
 0x1bc   : > { %1634 = vmax.xlane.f32.xlu0 %v1633_v41 }
 0x1bd   : > { %v1550_v42 = vpop.f32.mrf.mxu0 }
 0x1be   : > { %v1551_v43 = vadd.f32 %v1550_v42, %v1324_v33 }
 0x1bf   : > { %v2698_v44 = vpop.f32.mrf.mxu0  ;;  %v1626_v45 = vpop.f32.mrf.mxu1 }
 0x1c0   : > { %v1627_v46 = vadd.f32 %v1626_v45, %v1324_v33  ;;  %v1636_v47 = vsel %vm1325_vm2, %v1551_v43, -inf }
 0x1c1   : > { %v2703_v48 = vpop.f32.mrf.mxu1  ;;  %1637 = vmax.xlane.f32.xlu1 %v1636_v47  ;;  %v2463_v47 = vld [vmem:[%s3369_s7] ss:$0 sm:$0xff] }
 0x1c2   : > { %v1639_v49 = vsel %vm1325_vm2, %v1627_v46, -inf }
 0x1c5   : > { %1640 = vmax.xlane.f32.xlu1 %v1639_v49 }
 0x241   : > { %v1632_v50 = vpop.xlane.xlu0 %1631 }
 0x242   : > { %v1642_v51 = vsub.f32 %v1399_v36, %v1632_v50 }
 0x244   : > { %v1646_v52 = vmul.f32 1.442695, %v1642_v51 }
 0x245   : > { %v1635_v53 = vpop.xlane.xlu0 %1634 }
 0x246   : > { %2785 = vpow2.f32 %v1646_v52  ;;  %v1643_v54 = vsub.f32 %v1475_v37, %v1635_v53 }
 0x248   : > { %v1648_v55 = vmul.f32 1.442695, %v1643_v54 }
 0x24a   : > { %2787 = vpow2.f32 %v1648_v55  ;;  %v1638_v56 = vpop.xlane.xlu1 %1637 }
 0x24b   : > { %v1644_v57 = vsub.f32 %v1551_v43, %v1638_v56 }
 0x24d   : > { %v1650_v58 = vmul.f32 1.442695, %v1644_v57 }
 0x24e   : > { %v1641_v59 = vpop.xlane.xlu1 %1640 }
 0x24f   : > { %2789 = vpow2.f32 %v1650_v58  ;;  %v1645_v60 = vsub.f32 %v1627_v46, %v1641_v59 }
 0x251   : > { %v1652_v61 = vmul.f32 1.442695, %v1645_v60 }
 0x253   : > { %v2786_v62 = vpop.eup %2785  ;;  %2791 = vpow2.f32 %v1652_v61 }
 0x254   : > { %v1654_v63 = vsel %vm1325_vm2, %v2786_v62, 0.0 }
 0x255   : > { %1655 = vadd.xlane.f32.xlu0 %v1654_v63 }
 0x257   : > { %v2788_v0 = vpop.eup %2787 }
 0x258   : > { %v1657_v1 = vsel %vm1325_vm2, %v2788_v0, 0.0 }
 0x259   : > { %1658 = vadd.xlane.f32.xlu1 %v1657_v1 }
 0x25c   : > { %v2790_v3 = vpop.eup %2789 }
 0x25d   : > { %v1660_v4 = vsel %vm1325_vm2, %v2790_v3, 0.0 }
 0x25e   : > { %1661 = vadd.xlane.f32.xlu0 %v1660_v4 }
 0x260   : > { %v2792_v5 = vpop.eup %2791 }
 0x261   : > { %v1663_v6 = vsel %vm1325_vm2, %v2792_v5, 0.0 }
 0x262   : > { %1664 = vadd.xlane.f32.xlu1 %v1663_v6 }
 0x2de   : > { %v1656_v7 = vpop.xlane.xlu0 %1655 }
 0x2df   : > { %2793 = vrcp.f32 %v1656_v7 }
 0x2e2   : > { %v1659_v8 = vpop.xlane.xlu1 %1658 }
 0x2e3   : > { %2795 = vrcp.f32 %v1659_v8 }
 0x2e7   : > { %v1662_v9 = vpop.xlane.xlu0 %1661 }
 0x2e8   : > { %2797 = vrcp.f32 %v1662_v9 }
 0x2eb   : > { %v1665_v11 = vpop.xlane.xlu1 %1664 }
 0x2ec   : > { %v2794_v12 = vpop.eup %2793  ;;  %2799 = vrcp.f32 %v1665_v11 }
 0x2ed   : > { %v1670_v13 = vmul.f32 %v2794_v12, %v2786_v62 }
 0x2ef   : > { %2707 = vmatmul.mubr.msk.f32.vlgmr.msra.gmra.mxu0 %vm1325_vm2, %v1670_v13 }
 0x2f0   : > { %v2796_v16 = vpop.eup %2795  ;;  %2715 = vmatpush3.msra.mxu0 %v1251_v14  ;;  %2716 = vmatprep.mubr.msk.f32.mxu0 %vm2864_vm1, %v2863_v2 }
 0x2f1   : > { %v1671_v17 = vmul.f32 %v2796_v16, %v2788_v0  ;;  %2724 = vmatprep.subr.mxu0 %v2863_v2 }
 0x2f3   : > { %2712 = vmatmul.mubr.msk.f32.vlgmr.msra.gmra.mxu1 %vm1325_vm2, %v1671_v17 }
 0x2f4   : > { %2720 = vmatpush3.msra.mxu1 %v1321_v18  ;;  %2721 = vmatprep.mubr.msk.f32.mxu1 %vm2864_vm1, %v2863_v2 }
 0x2f5   : > { %v2798_v19 = vpop.eup %2797  ;;  %2729 = vmatprep.subr.mxu1 %v2863_v2 }
 0x2f6   : > { %v1672_v20 = vmul.f32 %v2798_v19, %v2790_v3 }
 0x2f8   : > { %2717 = vmatmul.mubr.msk.f32.vlgmr.msra.gmra.mxu0 %vm1325_vm2, %v1672_v20 }
 0x2f9   : > { %v2800_v21 = vpop.eup %2799  ;;  %2726 = vmatprep.mubr.msk.f32.mxu0 %vm2864_vm1, %v2863_v2  ;;  %2725 = vmatpush3.msra.mxu0 %v1966_v23 }
 0x2fa   : > { %v1673_v22 = vmul.f32 %v2800_v21, %v2792_v5  ;;  %2734 = vmatprep.subr.mxu0 %v2863_v2 }
 0x2fc   : > { %2722 = vmatmul.mubr.msk.f32.vlgmr.msra.gmra.mxu1 %vm1325_vm2, %v1673_v22 }
 0x2fd   : > { %2731 = vmatprep.mubr.msk.f32.mxu1 %vm2864_vm1, %v2863_v2  ;;  %2730 = vmatpush3.msra.mxu1 %v1967_v24 }
 0x2fe   : > { %2739 = vmatprep.subr.mxu1 %v2863_v2 }
 0x3af   : > { %v1743_v26 = vpop.f32.mrf.mxu0 }
 0x3b0   : > { %2727 = vmatmul.mubr.msk.f32.vlgmr.msra.gmra.mxu0 %vm1325_vm2, %v1743_v26 }
 0x3b1   : > { %v2708_v27 = vpop.f32.mrf.mxu0  ;;  %2735 = vmatpush3.msra.mxu0 %v1968_v25  ;;  %2736 = vmatprep.mubr.msk.f32.mxu0 %vm2864_vm1, %v2863_v2 }
 0x3b3   : > { %v1816_v29 = vpop.f32.mrf.mxu1 }
 0x3b4   : > { %2732 = vmatmul.mubr.msk.f32.vlgmr.msra.gmra.mxu1 %vm1325_vm2, %v1816_v29 }
 0x3b5   : > { %v2713_v30 = vpop.f32.mrf.mxu1  ;;  %2740 = vmatpush3.msra.mxu1 %v1969_v28  ;;  %2741 = vmatprep.mubr.msk.f32.mxu1 %vm2864_vm1, %v2863_v2 }
 0x3b8   : > { %v1889_v31 = vpop.f32.mrf.mxu0 }
 0x3b9   : > { %2737 = vmatmul.mubr.msk.f32.vlgmr.msra.gmra.mxu0 %vm1325_vm2, %v1889_v31 }
 0x3ba   : > { %v2718_v32 = vpop.f32.mrf.mxu0 }
 0x3bc   : > { %v1962_v33 = vpop.f32.mrf.mxu1 }
 0x3bd   : > { %2742 = vmatmul.mubr.msk.f32.vlgmr.msra.gmra.mxu1 %vm1325_vm2, %v1962_v33 }
 0x3be   : > { %v2723_v34 = vpop.f32.mrf.mxu1 }
 0x470   : > { %v2039_v35 = vpop.f32.mrf.mxu0 }
 0x471   : > { %v2262_v2 = vsel %vm382_vm0, %v2039_v35, 0.0 }
 0x472   : > { %v2728_v36 = vpop.f32.mrf.mxu0 }
 0x474   : > { %v2112_v37 = vpop.f32.mrf.mxu1 }
 0x475   : > { %v2263_v39 = vsel %vm382_vm0, %v2112_v37, 0.0 }
 0x476   : > { %v2733_v38 = vpop.f32.mrf.mxu1  ;;  %v2264_v42 = vadd.f32 %v2263_v39, %v2262_v2 }
 0x479   : > { %v2185_v40 = vpop.f32.mrf.mxu0 }
 0x47a   : > { %v2265_v41 = vsel %vm382_vm0, %v2185_v40, 0.0 }
 0x47b   : > { %v2738_v43 = vpop.f32.mrf.mxu0  ;;  %v2266_v44 = vadd.f32 %v2265_v41, %v2264_v42 }
 0x47d   : > { %v2258_v45 = vpop.f32.mrf.mxu1 }
 0x47e   : > { %v2267_v46 = vsel %vm382_vm0, %v2258_v45, 0.0 }
 0x47f   : > { %v2268_v48 = vadd.f32 %v2267_v46, %v2266_v44  ;;  %v2743_v49 = vpop.f32.mrf.mxu1 }
 0x481   : > { %v2276_v50 = vadd.f32 %v2463_v47, %v2268_v48 }
 0x483   : > { %2277 = vst.msk [vmem:[%s322_s25] sm:$0xff] %vm382_vm0, %v2276_v50 }
 0x484   : > { %2814 = shalt.err (!%p2811_p3)
}
 0x485   : > { %s2815_s22 = scalar_lea.hbm %s2290_s13, 128  ;;  %s2819_s24 = scalar_lea.hbm %s3370_s8, 256 }
 0x486   : > { %p2816_p4 = scmp.ne.s32.totalorder %s2290_s13, %s2815_s22  ;;  %p2820_p9 = scmp.lt.s32.totalorder %s2290_s13, %s3370_s8 }
 0x487   : > { %p2821_p10 = scmp.lt.s32.totalorder %s2819_s24, %s2815_s22 }
 0x488   : > { %p2817_p7 = pnand %p2816_p4, %p2949_p5 }
 0x489   : > { %p2822_p11 = por %p2821_p10, %p2820_p9 }
 0x48a   : > { %p2818_p8 = pneg %p2817_p7 }
 0x48c   : > { %p2823_p12 = pnand %p2822_p11, %p2818_p8 }
 0x48e   : > { %2826 = shalt.err (!%p2823_p12)
}
 0x48f   : > { %2744 = dma.vmem_to_hbm [thread:$0]  (%p2949_p5), %s2293_s26, 128, %s2290_s13, %s2279_s18  }
 0x490 PF: > { %p2750_p13 = scmp.ge.s32.totalorder %s2861_s30, 2  ;;  %s2304_s12 = sand.u32 1, %s2849_s27  }
 0x491   : > { %s2305_s19 = scalar_lea.sflag [#allocation3], %s2304_s12 }
 0x492   : > { %p2747_p0 = pnand %p2750_p13, %p2953_p6 }
 0x494   : > { %p2748_p1 = pneg %p2747_p0 }
 0x496   : > { %2844 = dma.done.wait (%p2748_p1), %s2305_s19, 128  }
 0x497   : > { %2846 = vsyncadd (%p2748_p1), %s2305_s19, 4294967168  ;;  %p18_p2 = scmp.ge.s32.totalorder %s2936_s11, 4   ;;  %s3373_s27 = smov %s2853_s28 }
 0x498   : > { %s3374_s28 = smov %s2857_s29  ;;  %s3375_s29 = smov %s2947_s14 }
 0x499   : > { %s3376_s30 = smov %s2936_s11  ;;  %20 = sbr.rel (!%p18_p2) target bundleno = 3 (0x3), region = 97 }
 0x49e   :  { %2310 = vsyncpa [#allocation3], 1 }
 0x49f   :  { %2312 = vsyncpa [#allocation3 + $0x1], 1 }

</bundles_post_ra>
